<compile_context>
chip_gen: v7x
topology: tpu7x:2x2x1
jax: 0.10.0
libtpu: 0.0.40
codegen_flags: <defaults>
</compile_context>

<pallas_src>
import jax
import jax.numpy as jnp
from jax.experimental import pallas as pl
from jax.experimental.pallas import tpu as pltpu

LANE = 128


def mlp_kernel(x_ref,
               w1_ref, b1_ref,
               w2_ref, b2_ref,
               w3_ref, b3_ref,
               w4_ref, b4_ref,
               o_ref):
    # fc1 + ReLU : bf16 operands on the MXU, f32 accumulate, f32 elementwise.
    h = jnp.dot(x_ref[...], w1_ref[...], preferred_element_type=jnp.float32)
    h = jnp.maximum(h + b1_ref[...], 0.0)
    # fc2 + ReLU
    h = jnp.dot(h.astype(jnp.bfloat16), w2_ref[...],
                preferred_element_type=jnp.float32)
    h = jnp.maximum(h + b2_ref[...], 0.0)
    # fc3 + ReLU
    h = jnp.dot(h.astype(jnp.bfloat16), w3_ref[...],
                preferred_element_type=jnp.float32)
    h = jnp.maximum(h + b3_ref[...], 0.0)
    # fc4 (no activation); output last dim is padded to 128 -> lane-dense store.
    h = jnp.dot(h.astype(jnp.bfloat16), w4_ref[...],
                preferred_element_type=jnp.float32)
    o_ref[...] = (h + b4_ref[...]).astype(o_ref.dtype)


def _pad_last(a, target):
    pad = target - a.shape[-1]
    if pad <= 0:
        return a
    return jnp.pad(a, [(0, 0)] * (a.ndim - 1) + [(0, pad)])


def prepare_params(params):
    """Cast weights to bf16 (biases stay f32) and pad the final layer's output
    width up to a multiple of 128 lanes. Returns (prepped_params, true_d_out)."""
    d_out = params["w4"].shape[1]
    d_out_p = max(LANE, ((d_out + LANE - 1) // LANE) * LANE)
    prepped = {}
    for li in range(1, 5):
        w = params[f"w{li}"]
        b = params[f"b{li}"]
        if li == 4:
            w = _pad_last(w, d_out_p)
            b = _pad_last(b, d_out_p)
        prepped[f"w{li}"] = w.astype(jnp.bfloat16)
        prepped[f"b{li}"] = b.astype(jnp.float32)
    return prepped, d_out


def joint_to_efast_net(x, params, *, batch_tile=256):
    """x: (B, input_dim) float32. params: dict of (in,out) weights / (1,out) biases."""
    prepped, d_out = prepare_params(params)
    B, d_in = x.shape
    d_out_p = prepped["w4"].shape[1]

    # Small B -> one grid step with the whole batch resident (no pipelining
    # overhead). Large B -> 256-row tiles: fills the 128/256-row MXU and gives
    # the parallel batch axis >=2 steps for v7x megacore sharding.
    bt = B if B <= batch_tile else batch_tile
    grid = (pl.cdiv(B, bt),)

    def weight_spec(shape):
        # Whole array, constant block index -> DMA'd once, resident in VMEM.
        return pl.BlockSpec(shape, lambda i: (0, 0))

    out_padded = pl.pallas_call(
        mlp_kernel,
        out_shape=jax.ShapeDtypeStruct((B, d_out_p), jnp.float32),
        grid_spec=pltpu.PrefetchScalarGridSpec(
            num_scalar_prefetch=0,
            grid=grid,
            in_specs=[
                pl.BlockSpec((bt, d_in), lambda i: (i, 0)),          # x tile
                weight_spec(prepped["w1"].shape), weight_spec(prepped["b1"].shape),
                weight_spec(prepped["w2"].shape), weight_spec(prepped["b2"].shape),
                weight_spec(prepped["w3"].shape), weight_spec(prepped["b3"].shape),
                weight_spec(prepped["w4"].shape), weight_spec(prepped["b4"].shape),
            ],
            out_specs=pl.BlockSpec((bt, d_out_p), lambda i: (i, 0)),
        ),
        compiler_params=pltpu.CompilerParams(
            dimension_semantics=("parallel",)),
    )(x.astype(jnp.bfloat16),
      prepped["w1"], prepped["b1"],
      prepped["w2"], prepped["b2"],
      prepped["w3"], prepped["b3"],
      prepped["w4"], prepped["b4"])

    # Drop the lane padding added for the store path.
    return out_padded[:, :d_out]


def init_params(key, input_dim, output_dim):
    """Deterministic synthetic init. Weights stored (in, out); biases (1, out)."""
    dims = [input_dim, 256, 128, 64, output_dim]
    params = {}
    for li in range(4):
        key, kw, kb = jax.random.split(key, 3)
        fan_in, fan_out = dims[li], dims[li + 1]
        bound = 1.0 / jnp.sqrt(fan_in)
        # PyTorch stores (out, in); init in that shape then transpose to (in, out).
        w_torch = jax.random.uniform(kw, (fan_out, fan_in), jnp.float32, -bound, bound)
        b = jax.random.uniform(kb, (1, fan_out), jnp.float32, -bound, bound)
        params[f"w{li+1}"] = jnp.transpose(w_torch)
        params[f"b{li+1}"] = b
    return params


def reference_forward(x, params):
    """Pure-JAX reference mirroring the kernel's numerics (bf16 matmul operands,
    f32 accumulation and f32 elementwise)."""
    def lin(h, w, b):
        return jnp.dot(h.astype(jnp.bfloat16), w.astype(jnp.bfloat16),
                       preferred_element_type=jnp.float32) + b
    h = jnp.maximum(lin(x, params["w1"], params["b1"]), 0.0)
    h = jnp.maximum(lin(h, params["w2"], params["b2"]), 0.0)
    h = jnp.maximum(lin(h, params["w3"], params["b3"]), 0.0)
    return lin(h, params["w4"], params["b4"])


if __name__ == "__main__":
    # Small synthetic shapes consistent with the module (input/output dims come
    # from CSV column counts in the original script; representative sizes here).
    B = 16
    INPUT_DIM = 96    # e.g. 32 joints * 3 coords
    OUTPUT_DIM = 32

    key = jax.random.PRNGKey(0)
    key, kx = jax.random.split(key)
    x = jax.random.normal(kx, (B, INPUT_DIM), jnp.float32)

    params = init_params(jax.random.PRNGKey(0), INPUT_DIM, OUTPUT_DIM)

    out = joint_to_efast_net(x, params)
    out = jax.block_until_ready(out)

    ref = reference_forward(x, params)
    assert out.shape == (B, OUTPUT_DIM), out.shape
    assert jnp.allclose(out, ref, atol=1e-2, rtol=1e-2), "mismatch vs reference"

    print("KERNEL_OK")
</pallas_src>

<mosaic_0001>
module attributes {stable_mosaic.version = 11 : i64} {
  func.func @mlp_kernel(%arg0: i32, %arg1: memref<16x96xbf16, #tpu.memory_space<vmem>>, %arg2: memref<96x256xbf16, #tpu.memory_space<vmem>>, %arg3: memref<1x256xf32, #tpu.memory_space<vmem>>, %arg4: memref<256x128xbf16, #tpu.memory_space<vmem>>, %arg5: memref<1x128xf32, #tpu.memory_space<vmem>>, %arg6: memref<128x64xbf16, #tpu.memory_space<vmem>>, %arg7: memref<1x64xf32, #tpu.memory_space<vmem>>, %arg8: memref<64x128xbf16, #tpu.memory_space<vmem>>, %arg9: memref<1x128xf32, #tpu.memory_space<vmem>>, %arg10: memref<16x128xf32, #tpu.memory_space<vmem>>) attributes {dimension_semantics = [#tpu.dimension_semantics<parallel>], iteration_bounds = array<i64: 1>, scalar_prefetch = 0 : i64, scratch_operands = 0 : i64, tpu.core_type = #tpu.core_type<tc>, window_params = [{transform_indices = @transform_0, window_bounds = array<i64: 16, 96>}, {pipeline_mode = #tpu.pipeline_mode<synchronous>, transform_indices = @transform_1, window_bounds = array<i64: 96, 256>}, {pipeline_mode = #tpu.pipeline_mode<synchronous>, transform_indices = @transform_2, window_bounds = array<i64: 1, 256>}, {pipeline_mode = #tpu.pipeline_mode<synchronous>, transform_indices = @transform_3, window_bounds = array<i64: 256, 128>}, {pipeline_mode = #tpu.pipeline_mode<synchronous>, transform_indices = @transform_4, window_bounds = array<i64: 1, 128>}, {pipeline_mode = #tpu.pipeline_mode<synchronous>, transform_indices = @transform_5, window_bounds = array<i64: 128, 64>}, {pipeline_mode = #tpu.pipeline_mode<synchronous>, transform_indices = @transform_6, window_bounds = array<i64: 1, 64>}, {pipeline_mode = #tpu.pipeline_mode<synchronous>, transform_indices = @transform_7, window_bounds = array<i64: 64, 128>}, {pipeline_mode = #tpu.pipeline_mode<synchronous>, transform_indices = @transform_8, window_bounds = array<i64: 1, 128>}, {transform_indices = @transform_9, window_bounds = array<i64: 16, 128>}]} {
    %c0 = arith.constant 0 : index
    %c0_0 = arith.constant 0 : index
    %0 = vector.load %arg1[%c0, %c0_0] : memref<16x96xbf16, #tpu.memory_space<vmem>>, vector<16x96xbf16>
    %c0_1 = arith.constant 0 : index
    %c0_2 = arith.constant 0 : index
    %1 = vector.load %arg2[%c0_1, %c0_2] : memref<96x256xbf16, #tpu.memory_space<vmem>>, vector<96x256xbf16>
    %cst = arith.constant dense<0.000000e+00> : vector<16x256xf32>
    %2 = tpu.matmul %0, %1, %cst {dimension_numbers = #tpu.dot_dimension_numbers<[1], [0], [0], [1], [0, 0, 1, 1], [], []>} : vector<16x96xbf16>, vector<96x256xbf16>, vector<16x256xf32> -> vector<16x256xf32>
    %c0_3 = arith.constant 0 : index
    %c0_4 = arith.constant 0 : index
    %3 = vector.load %arg3[%c0_3, %c0_4] : memref<1x256xf32, #tpu.memory_space<vmem>>, vector<1x256xf32>
    %4 = vector.broadcast %3 : vector<1x256xf32> to vector<16x256xf32>
    %5 = arith.addf %2, %4 : vector<16x256xf32>
    %cst_5 = arith.constant 0.000000e+00 : f32
    %6 = vector.broadcast %cst_5 : f32 to vector<16x256xf32>
    %7 = arith.maximumf %5, %6 : vector<16x256xf32>
    %8 = arith.truncf %7 : vector<16x256xf32> to vector<16x256xbf16>
    %c0_6 = arith.constant 0 : index
    %c0_7 = arith.constant 0 : index
    %9 = vector.load %arg4[%c0_6, %c0_7] : memref<256x128xbf16, #tpu.memory_space<vmem>>, vector<256x128xbf16>
    %cst_8 = arith.constant dense<0.000000e+00> : vector<16x128xf32>
    %10 = tpu.matmul %8, %9, %cst_8 {dimension_numbers = #tpu.dot_dimension_numbers<[1], [0], [0], [1], [0, 0, 1, 1], [], []>} : vector<16x256xbf16>, vector<256x128xbf16>, vector<16x128xf32> -> vector<16x128xf32>
    %c0_9 = arith.constant 0 : index
    %c0_10 = arith.constant 0 : index
    %11 = vector.load %arg5[%c0_9, %c0_10] : memref<1x128xf32, #tpu.memory_space<vmem>>, vector<1x128xf32>
    %12 = vector.broadcast %11 : vector<1x128xf32> to vector<16x128xf32>
    %13 = arith.addf %10, %12 : vector<16x128xf32>
    %cst_11 = arith.constant 0.000000e+00 : f32
    %14 = vector.broadcast %cst_11 : f32 to vector<16x128xf32>
    %15 = arith.maximumf %13, %14 : vector<16x128xf32>
    %16 = arith.truncf %15 : vector<16x128xf32> to vector<16x128xbf16>
    %c0_12 = arith.constant 0 : index
    %c0_13 = arith.constant 0 : index
    %17 = vector.load %arg6[%c0_12, %c0_13] : memref<128x64xbf16, #tpu.memory_space<vmem>>, vector<128x64xbf16>
    %cst_14 = arith.constant dense<0.000000e+00> : vector<16x64xf32>
    %18 = tpu.matmul %16, %17, %cst_14 {dimension_numbers = #tpu.dot_dimension_numbers<[1], [0], [0], [1], [0, 0, 1, 1], [], []>} : vector<16x128xbf16>, vector<128x64xbf16>, vector<16x64xf32> -> vector<16x64xf32>
    %c0_15 = arith.constant 0 : index
    %c0_16 = arith.constant 0 : index
    %19 = vector.load %arg7[%c0_15, %c0_16] : memref<1x64xf32, #tpu.memory_space<vmem>>, vector<1x64xf32>
    %20 = vector.broadcast %19 : vector<1x64xf32> to vector<16x64xf32>
    %21 = arith.addf %18, %20 : vector<16x64xf32>
    %cst_17 = arith.constant 0.000000e+00 : f32
    %22 = vector.broadcast %cst_17 : f32 to vector<16x64xf32>
    %23 = arith.maximumf %21, %22 : vector<16x64xf32>
    %24 = arith.truncf %23 : vector<16x64xf32> to vector<16x64xbf16>
    %c0_18 = arith.constant 0 : index
    %c0_19 = arith.constant 0 : index
    %25 = vector.load %arg8[%c0_18, %c0_19] : memref<64x128xbf16, #tpu.memory_space<vmem>>, vector<64x128xbf16>
    %cst_20 = arith.constant dense<0.000000e+00> : vector<16x128xf32>
    %26 = tpu.matmul %24, %25, %cst_20 {dimension_numbers = #tpu.dot_dimension_numbers<[1], [0], [0], [1], [0, 0, 1, 1], [], []>} : vector<16x64xbf16>, vector<64x128xbf16>, vector<16x128xf32> -> vector<16x128xf32>
    %c0_21 = arith.constant 0 : index
    %c0_22 = arith.constant 0 : index
    %27 = vector.load %arg9[%c0_21, %c0_22] : memref<1x128xf32, #tpu.memory_space<vmem>>, vector<1x128xf32>
    %28 = vector.broadcast %27 : vector<1x128xf32> to vector<16x128xf32>
    %29 = arith.addf %26, %28 : vector<16x128xf32>
    %c0_23 = arith.constant 0 : index
    %c0_24 = arith.constant 0 : index
    %30 = vector.load %arg10[%c0_23, %c0_24] : memref<16x128xf32, #tpu.memory_space<vmem>>, vector<16x128xf32>
    tpu.vector_store %arg10[%c0_23, %c0_24], %29 {strides = array<i32>} : memref<16x128xf32, #tpu.memory_space<vmem>>, vector<16x128xf32>,
    return
  }
  func.func @transform_0(%arg0: i32) -> (i32, i32) {
    %c0_i32 = arith.constant 0 : i32
    %c0_i32_0 = arith.constant 0 : i32
    return %arg0, %c0_i32 : i32, i32
  }
  func.func @transform_1(%arg0: i32) -> (i32, i32) {
    %c0_i32 = arith.constant 0 : i32
    %c0_i32_0 = arith.constant 0 : i32
    %c0_i32_1 = arith.constant 0 : i32
    return %c0_i32, %c0_i32_0 : i32, i32
  }
  func.func @transform_2(%arg0: i32) -> (i32, i32) {
    %c0_i32 = arith.constant 0 : i32
    %c0_i32_0 = arith.constant 0 : i32
    %c0_i32_1 = arith.constant 0 : i32
    return %c0_i32, %c0_i32_0 : i32, i32
  }
  func.func @transform_3(%arg0: i32) -> (i32, i32) {
    %c0_i32 = arith.constant 0 : i32
    %c0_i32_0 = arith.constant 0 : i32
    %c0_i32_1 = arith.constant 0 : i32
    return %c0_i32, %c0_i32_0 : i32, i32
  }
  func.func @transform_4(%arg0: i32) -> (i32, i32) {
    %c0_i32 = arith.constant 0 : i32
    %c0_i32_0 = arith.constant 0 : i32
    %c0_i32_1 = arith.constant 0 : i32
    return %c0_i32, %c0_i32_0 : i32, i32
  }
  func.func @transform_5(%arg0: i32) -> (i32, i32) {
    %c0_i32 = arith.constant 0 : i32
    %c0_i32_0 = arith.constant 0 : i32
    %c0_i32_1 = arith.constant 0 : i32
    return %c0_i32, %c0_i32_0 : i32, i32
  }
  func.func @transform_6(%arg0: i32) -> (i32, i32) {
    %c0_i32 = arith.constant 0 : i32
    %c0_i32_0 = arith.constant 0 : i32
    %c0_i32_1 = arith.constant 0 : i32
    return %c0_i32, %c0_i32_0 : i32, i32
  }
  func.func @transform_7(%arg0: i32) -> (i32, i32) {
    %c0_i32 = arith.constant 0 : i32
    %c0_i32_0 = arith.constant 0 : i32
    %c0_i32_1 = arith.constant 0 : i32
    return %c0_i32, %c0_i32_0 : i32, i32
  }
  func.func @transform_8(%arg0: i32) -> (i32, i32) {
    %c0_i32 = arith.constant 0 : i32
    %c0_i32_0 = arith.constant 0 : i32
    %c0_i32_1 = arith.constant 0 : i32
    return %c0_i32, %c0_i32_0 : i32, i32
  }
  func.func @transform_9(%arg0: i32) -> (i32, i32) {
    %c0_i32 = arith.constant 0 : i32
    %c0_i32_0 = arith.constant 0 : i32
    return %arg0, %c0_i32 : i32, i32
  }
}

</mosaic_0001>

<bundles_post_ra>
// kernel: tpu_custom_call.1
= control target key start
LH: loop header
LB: loop body
LE: loop exit
PB: predicated region body
PF: predicated region fallthrough
CT: control target
= control target key end

     0   :  { %14 = vsyncpa [#allocation3], 0  ;;  %s1094_s0 = inlined_call_operand.hbm [shape: bf16[16,96], index: 0, kind: input, shape index: {}]   ;;  %s1095_s1 = inlined_call_operand.vmem [shape: bf16[96,256], index: 1, kind: input, shape index: {}]   ;;  %s1096_s2 = inlined_call_operand.vmem [shape: f32[1,256], index: 2, kind: input, shape index: {}]   ;;  %s1097_s3 = inlined_call_operand.hbm [shape: bf16[256,128], index: 3, kind: input, shape index: {}]   ;;  %s1098_s4 = inlined_call_operand.vmem [shape: f32[1,128], index: 4, kind: input, shape index: {}]   ;;  %s1099_s5 = inlined_call_operand.vmem [shape: bf16[128,64], index: 5, kind: input, shape index: {}]   ;;  %s1100_s6 = inlined_call_operand.vmem [shape: f32[1,64], index: 6, kind: input, shape index: {}]   ;;  %s1101_s7 = inlined_call_operand.hbm [shape: bf16[64,128], index: 7, kind: input, shape index: {}]   ;;  %s1102_s8 = inlined_call_operand.vmem [shape: f32[1,128], index: 8, kind: input, shape index: {}]   ;;  %s1103_s9 = inlined_call_operand.hbm [shape: f32[16,128], index: 9, kind: output, shape index: {}]  }
   0x1   :  { %15 = vsyncpa [#allocation6], 0 }
   0x2   :  { %16 = vsyncpa [#allocation4], 0  ;;  %s883_s30 = smov [#allocation5]   ;;  %s884_s11 = smov [#allocation2]  }
   0x3   :  { %s38_s10 = sshll.u32 %s883_s30, 4  ;;  %s22_s12 = sshll.u32 %s884_s11, 4  ;;  %s39_s10 = int_to_ptr.vmem [resolvable:$true] %s38_s10  ;;  %s944_s12 = int_to_ptr.vmem [resolvable:$true] %s22_s12 }
   0x4   :  { %s789_s15 = scalar_lea.hbm %s1097_s3, 2048 }
   0x5   :  { %p790_p0 = scmp.ne.s32.totalorder %s1097_s3, %s789_s15  ;;  %p793_p1 = scmp.lt.u32.totalorder %s789_s15, %s1097_s3 }
   0x7   :  { %p795_p2 = pnand %p793_p1, %p790_p0 }
   0x9   :  { %798 = shalt.err (!%p795_p2)
}
   0xa   :  { %s799_s20 = scalar_lea.vmem %s39_s10, 2048  ;;  %p804_p4 = scmp.lt.s32.totalorder %s39_s10, %s39_s10 }
   0xb   :  { %p800_p3 = scmp.ne.s32.totalorder %s39_s10, %s799_s20  ;;  %p805_p5 = scmp.lt.s32.totalorder %s799_s20, %s799_s20 }
   0xd   :  { %p806_p6 = por %p805_p5, %p804_p4 }
   0xf   :  { %p807_p7 = pnand %p806_p6, %p800_p3 }
  0x11   :  { %810 = shalt.err (!%p807_p7)
}
  0x12   :  { %s885_s21 = smov 64   ;;  %s886_s22 = smov 4  }
  0x13   :  { %44 = dma.hbm_to_vmem [thread:$0]  %s1097_s3, 2048, %s39_s10, [#allocation6], %s885_s21, %s885_s21, %s886_s22  }
  0x14   :  { %s811_s27 = scalar_lea.hbm %s1094_s0, 128 }
  0x15   :  { %p812_p8 = scmp.ne.s32.totalorder %s1094_s0, %s811_s27  ;;  %p815_p9 = scmp.lt.u32.totalorder %s811_s27, %s1094_s0 }
  0x17   :  { %p817_p10 = pnand %p815_p9, %p812_p8 }
  0x19   :  { %820 = shalt.err (!%p817_p10)
}
  0x1a   :  { %s821_s13 = scalar_lea.vmem %s944_s12, 128  ;;  %p826_p12 = scmp.lt.s32.totalorder %s944_s12, %s944_s12 }
  0x1b   :  { %p822_p11 = scmp.ne.s32.totalorder %s944_s12, %s821_s13  ;;  %p827_p13 = scmp.lt.s32.totalorder %s821_s13, %s821_s13 }
  0x1d   :  { %p828_p0 = por %p827_p13, %p826_p12 }
  0x1f   :  { %p829_p1 = pnand %p828_p0, %p822_p11 }
  0x21   :  { %832 = shalt.err (!%p829_p1)
}
  0x22   :  { %28 = dma.hbm_to_vmem [thread:$0]  %s1094_s0, 128, %s944_s12, [#allocation3], %s885_s21, %s885_s21, %s886_s22  }
  0x23   :  { %s887_s14 = smov [#allocation7]   ;;  %s833_s18 = scalar_lea.hbm %s1101_s7, 512 }
  0x24   :  { %s56_s15 = sshll.u32 %s887_s14, 4  ;;  %p834_p2 = scmp.ne.s32.totalorder %s1101_s7, %s833_s18  ;;  %s57_s15 = int_to_ptr.vmem [resolvable:$true] %s56_s15 }
  0x25   :  { %p837_p3 = scmp.lt.u32.totalorder %s833_s18, %s1101_s7 }
  0x27   :  { %p839_p4 = pnand %p837_p3, %p834_p2 }
  0x29   :  { %842 = shalt.err (!%p839_p4)
}
  0x2a   :  { %s843_s25 = scalar_lea.vmem %s57_s15, 512  ;;  %p848_p6 = scmp.lt.s32.totalorder %s57_s15, %s57_s15 }
  0x2b   :  { %p844_p5 = scmp.ne.s32.totalorder %s57_s15, %s843_s25  ;;  %p849_p7 = scmp.lt.s32.totalorder %s843_s25, %s843_s25 }
  0x2d   :  { %p850_p8 = por %p849_p7, %p848_p6 }
  0x2f   :  { %p851_p9 = pnand %p850_p8, %p844_p5 }
  0x31   :  { %854 = shalt.err (!%p851_p9)
}
  0x32   :  { %62 = dma.hbm_to_vmem [thread:$0]  %s1101_s7, 512, %s57_s15, [#allocation6], %s885_s21, %s885_s21, %s886_s22  }
  0x33   :  { %877 = dma.done.wait [#allocation3], 128  }
  0x34   :  { %878 = vsyncadd [#allocation3], 4294967168 }
  0x35   :  { %879 = dma.done.wait [#allocation6], 2560  }
  0x36   :  { %880 = vsyncadd [#allocation6], 4294964736  ;;  %v888_v0 = vmov 0   ;;  %v742_v1 = vld [vmem:[%s1095_s1 + $0x4] ss:$8 sps:$4 sm:$0xff]   ;;  %v763_v12 = vld [vmem:[#allocation5 + $0x48] sm:$0xff]   ;;  %v91_v36 = vlaneseq }
  0x37   :  { %202 = vmatprep.mubr.bf16.mxu0 %v888_v0  ;;  %v744_v2 = vld [vmem:[%s1095_s1] ss:$8 sps:$4 sm:$0xff]   ;;  %170 = vmatprep.subr.bf16.mxu0 %v742_v1  ;;  %v745_v3 = vld [vmem:[%s1095_s1 + $0x14] ss:$8 sps:$4 sm:$0xff]   ;;  %v747_v4 = vld [vmem:[%s1095_s1 + $0x10] ss:$8 sps:$4 sm:$0xff]  }
  0x38   :  { %171 = vmatpush1.bf16.msra.mxu0 %v744_v2  ;;  %v748_v5 = vld [vmem:[%s1095_s1 + $0x24] ss:$8 sps:$4 sm:$0xff]   ;;  %v750_v6 = vld [vmem:[%s1095_s1 + $0x20] ss:$8 sps:$4 sm:$0xff]   ;;  %v751_v7 = vld [vmem:[%s1095_s1 + $0x34] ss:$8 sps:$4 sm:$0xff]  }
  0x39   :  { %172 = vmatprep.subr.bf16.mxu0 %v745_v3  ;;  %v753_v8 = vld [vmem:[%s1095_s1 + $0x30] ss:$8 sps:$4 sm:$0xff]   ;;  %v761_v9 = vld [vmem:[#allocation5 + $0x40] sm:$0xff]   ;;  %v757_v16 = vld [vmem:[%s1095_s1 + $0x54] ss:$8 sps:$4 sm:$0xff]   ;;  %vm166_vm0 = vcmask 785408  }
  0x3a   :  { %v754_v10 = vld [vmem:[%s1095_s1 + $0x44] ss:$8 sps:$4 sm:$0xff]   ;;  %663 = vmatprep.subr.bf16.mxu1 %v761_v9  ;;  %v764_v13 = vld [vmem:[#allocation5 + $0x8] sm:$0xff]   ;;  %v765_v14 = vld [vmem:[#allocation5 + $0x50] sm:$0xff]   ;;  %v889_v31 = vmov 0.0   ;;  %v92_v37 = vshrl.u32 %v91_v36, 7 }
  0x3b   :  { %v762_v11 = vld [vmem:[#allocation5] sm:$0xff]   ;;  %v766_v17 = vld [vmem:[#allocation5 + $0x10] sm:$0xff]   ;;  %v767_v18 = vld [vmem:[#allocation5 + $0x58] sm:$0xff]   ;;  %vm890_vm1 = vmmov 0   ;;  %vm552_vm2 = vcmask 523264   ;;  %s891_s24 = smov [#allocation8]  }
  0x3c   :  { %173 = vmatpush1.bf16.msra.mxu0 %v747_v4  ;;  %664 = vmatpush3.bf16.msra.mxu1 %v762_v11  ;;  %v756_v15 = vld [vmem:[%s1095_s1 + $0x40] ss:$8 sps:$4 sm:$0xff]   ;;  %v759_v19 = vld [vmem:[%s1095_s1 + $0x50] ss:$8 sps:$4 sm:$0xff]   ;;  %v93_v38 = vsub.s32 0, %v92_v37  ;;  %v97_v40 = vsub.s32 1, %v92_v37 }
  0x3d   :  { %174 = vmatprep.subr.bf16.mxu0 %v748_v5  ;;  %665 = vmatprep.subr.bf16.mxu1 %v763_v12  ;;  %v768_v20 = vld [vmem:[#allocation5 + $0x18] sm:$0xff]   ;;  %v769_v22 = vld [vmem:[#allocation5 + $0x60] sm:$0xff]   ;;  %v771_v24 = vld [vmem:[#allocation5 + $0x68] sm:$0xff]   ;;  %s604_s25 = sshll.u32 %s891_s24, 4  ;;  %s605_s25 = int_to_ptr.vmem [resolvable:$true] %s604_s25 }
  0x3e   :  { %v760_v21 = vld [vmem:[#allocation2] sm:$0xff]   ;;  %v770_v23 = vld [vmem:[#allocation5 + $0x20] sm:$0xff]   ;;  %v772_v25 = vld [vmem:[#allocation5 + $0x28] sm:$0xff]   ;;  %p860_p11 = scmp.lt.s32.totalorder %s605_s25, %s605_s25 }
  0x3f   :  { %v773_v26 = vld [vmem:[#allocation5 + $0x70] sm:$0xff]   ;;  %v775_v28 = vld [vmem:[#allocation5 + $0x78] sm:$0xff]   ;;  %v778_v32 = vld [vmem:[%s1099_s5 + $0x8] sm:$0xff]  }
  0x40   :  { %175 = vmatpush1.bf16.msra.mxu0 %v750_v6  ;;  %666 = vmatpush3.bf16.msra.mxu1 %v764_v13  ;;  %v774_v27 = vld [vmem:[#allocation5 + $0x30] sm:$0xff]   ;;  %v776_v29 = vld [vmem:[#allocation5 + $0x38] sm:$0xff]   ;;  %v779_v33 = vld [vmem:[%s1099_s5 + $0x10] sm:$0xff]  }
  0x41   :  { %176 = vmatprep.subr.bf16.mxu0 %v751_v7  ;;  %667 = vmatprep.subr.bf16.mxu1 %v765_v14  ;;  %v777_v30 = vld [vmem:[%s1099_s5] sm:$0xff]   ;;  %v780_v34 = vld [vmem:[%s1099_s5 + $0x18] sm:$0xff]   ;;  %v782_v57 = vld [vmem:[%s1099_s5 + $0x28] sm:$0xff]  }
  0x42   :  { %v781_v35 = vld [vmem:[%s1099_s5 + $0x20] sm:$0xff]   ;;  %v783_v58 = vld [vmem:[%s1099_s5 + $0x30] sm:$0xff]   ;;  %v784_v59 = vld [vmem:[%s1099_s5 + $0x38] sm:$0xff]  }
  0x43   :  { %v89_v39 = vld [vmem:[%s1096_s2] sm:$0x3]  ;;  %v785_v60 = vld [vmem:[#allocation7] sm:$0xff]   ;;  %v786_v61 = vld [vmem:[#allocation7 + $0x8] sm:$0xff]  }
  0x44   :  { %177 = vmatpush1.bf16.msra.mxu0 %v753_v8  ;;  %668 = vmatpush3.bf16.msra.mxu1 %v766_v17  ;;  %v94_v41 = vrot.slane %v89_v39, %v93_v38  ;;  %v98_v42 = vrot.slane %v89_v39, %v97_v40  ;;  %v631_v63 = vld [vmem:[%s1098_s4] ss:$0 sm:$0xff] }
  0x45   :  { %178 = vmatprep.subr.bf16.mxu0 %v754_v10  ;;  %669 = vmatprep.subr.bf16.mxu1 %v767_v18  ;;  %v787_v10 = vld [vmem:[#allocation7 + $0x10] sm:$0xff]   ;;  %v788_v11 = vld [vmem:[#allocation7 + $0x18] sm:$0xff]  }
  0x46   :  { %v648_v12 = vld [vmem:[%s1100_s6] ss:$0 sm:$0xff]  ;;  %s855_s6 = scalar_lea.vmem %s605_s25, 256 }
  0x47   :  { %p856_p10 = scmp.ne.s32.totalorder %s605_s25, %s855_s6  ;;  %p861_p12 = scmp.lt.s32.totalorder %s855_s6, %s855_s6 }
  0x48   :  { %179 = vmatpush1.bf16.msra.mxu0 %v756_v15  ;;  %670 = vmatpush3.bf16.msra.mxu1 %v768_v20 }
  0x49   :  { %180 = vmatprep.subr.bf16.mxu0 %v757_v16  ;;  %671 = vmatprep.subr.bf16.mxu1 %v769_v22  ;;  %v657_v22 = vld [vmem:[%s1102_s8] ss:$0 sm:$0xff]  ;;  %p862_p13 = por %p861_p12, %p860_p11 }
  0x4b   :  { %p863_p0 = pnand %p862_p13, %p856_p10 }
  0x4c   :  { %181 = vmatpush1.bf16.msra.mxu0 %v759_v19  ;;  %672 = vmatpush3.bf16.msra.mxu1 %v770_v23 }
  0x4d   :  { %673 = vmatprep.subr.bf16.mxu1 %v771_v24  ;;  %699 = vmatprep.subr.bf16.mxu0 %v889_v31 }
  0x4f   :  { %630 = vmatmul.mubr.msk.bf16.vlgmr.msra.gmra.mrb[0].mxu0 %vm166_vm0, %v760_v21 }
  0x50   :  { %674 = vmatpush3.bf16.msra.mxu1 %v772_v25  ;;  %700 = vmatpush3.bf16.msra.mxu0 %v777_v30 }
  0x51   :  { %675 = vmatprep.subr.bf16.mxu1 %v773_v26  ;;  %701 = vmatprep.subr.bf16.mxu0 %v889_v31 }
  0x52   :  { %715 = vmatprep.mubr.msk.bf16.mxu0 %vm890_vm1, %v889_v31 }
  0x54   :  { %676 = vmatpush3.bf16.msra.mxu1 %v774_v27  ;;  %702 = vmatpush3.bf16.msra.mxu0 %v778_v32 }
  0x55   :  { %677 = vmatprep.subr.bf16.mxu1 %v775_v28  ;;  %703 = vmatprep.subr.bf16.mxu0 %v889_v31 }
  0x58   :  { %678 = vmatpush3.bf16.msra.mxu1 %v776_v29  ;;  %704 = vmatpush3.bf16.msra.mxu0 %v779_v33 }
  0x59   :  { %719 = vmatprep.subr.bf16.mxu1 %v889_v31  ;;  %705 = vmatprep.subr.bf16.mxu0 %v889_v31 }
  0x5c   :  { %706 = vmatpush3.bf16.msra.mxu0 %v780_v34 }
  0x5d   :  { %707 = vmatprep.subr.bf16.mxu0 %v889_v31 }
  0x60   :  { %708 = vmatpush3.bf16.msra.mxu0 %v781_v35 }
  0x61   :  { %709 = vmatprep.subr.bf16.mxu0 %v889_v31 }
  0x64   :  { %710 = vmatpush3.bf16.msra.mxu0 %v782_v57 }
  0x65   :  { %711 = vmatprep.subr.bf16.mxu0 %v889_v31 }
  0x68   :  { %712 = vmatpush3.bf16.msra.mxu0 %v783_v58 }
  0x69   :  { %713 = vmatprep.subr.bf16.mxu0 %v889_v31 }
  0x6c   :  { %714 = vmatpush3.bf16.msra.mxu0 %v784_v59 }
 0x122   :  { %v204_v43 = vpop.f32.mrb[0].mxu0 }
 0x123   :  { %v205_v44 = vadd.f32 %v204_v43, %v94_v41  ;;  %v206_v45 = vpop.f32.mrb[1].mxu0 }
 0x124   :  { %v207_v46 = vadd.f32 %v206_v45, %v98_v42  ;;  %v208_v47 = vpop.f32.mrb[2].mxu0 }
 0x125   :  { %v209_v48 = vadd.f32 %v208_v47, %v94_v41  ;;  %v210_v49 = vpop.f32.mrb[3].mxu0  ;;  %v213_v51 = vmax.f32 %v205_v44, 0.0 }
 0x126   :  { %v211_v50 = vadd.f32 %v210_v49, %v98_v42  ;;  %v214_v53 = vmax.f32 %v207_v46, 0.0 }
 0x127   :  { %v215_v52 = vmax.f32 %v209_v48, 0.0 }
 0x128   :  { %v216_v54 = vmax.f32 %v211_v50, 0.0 }
 0x129   :  { %v217_v55 = vpack.c.bf16 %v215_v52, %v213_v51 }
 0x12a   :  { %v218_v56 = vpack.c.bf16 %v216_v54, %v214_v53 }
 0x12c   :  { %386 = vmatprep.mubr.bf16.mxu1 %v218_v56 }
 0x12d   :  { %387 = vmatmul.mubr.bf16.vlgmr.msra.gmra.mrb[0].mxu1 %v217_v55 }
 0x12e   :  { %727 = vmatprep.mubr.msk.bf16.mxu1 %vm890_vm1, %v889_v31  ;;  %720 = vmatpush3.bf16.msra.mxu1 %v785_v60 }
 0x12f   :  { %721 = vmatprep.subr.bf16.mxu1 %v889_v31 }
 0x132   :  { %722 = vmatpush3.bf16.msra.mxu1 %v786_v61 }
 0x133   :  { %723 = vmatprep.subr.bf16.mxu1 %v889_v31 }
 0x136   :  { %724 = vmatpush3.bf16.msra.mxu1 %v787_v10 }
 0x137   :  { %725 = vmatprep.subr.bf16.mxu1 %v889_v31 }
 0x13a   :  { %726 = vmatpush3.bf16.msra.mxu1 %v788_v11 }
 0x200   :  { %v679_v62 = vpop.f32.mrb[0].mxu1 }
 0x201   :  { %v680_v0 = vpop.f32.mrb[1].mxu1 }
 0x202   :  { %v681_v1 = vadd.f32 %v680_v0, %v679_v62  ;;  %v682_v2 = vpop.f32.mrb[2].mxu1 }
 0x203   :  { %v683_v3 = vpop.f32.mrb[3].mxu1 }
 0x204   :  { %v389_v4 = vadd.f32 %v681_v1, %v631_v63  ;;  %v684_v5 = vadd.f32 %v683_v3, %v682_v2 }
 0x206   :  { %v392_v6 = vadd.f32 %v684_v5, %v631_v63  ;;  %v395_v7 = vmax.f32 %v389_v4, 0.0 }
 0x208   :  { %v396_v8 = vmax.f32 %v392_v6, 0.0 }
 0x20a   :  { %v397_v9 = vpack.c.bf16 %v396_v8, %v395_v7 }
 0x20c   :  { %716 = vmatmul.mubr.bf16.vlgmr.msra.gmra.mrb[4].mxu0 %v397_v9 }
 0x2df   :  { %v503_v13 = vpop.f32.mrb[4].mxu0 }
 0x2e0   :  { %v504_v14 = vadd.f32 %v648_v12, %v503_v13  ;;  %v717_v15 = vpop.f32.mrb[5].mxu0 }
 0x2e1   :  { %v506_v16 = vpop.f32.mrb[6].mxu0 }
 0x2e2   :  { %v507_v17 = vadd.f32 %v648_v12, %v506_v16  ;;  %v718_v18 = vpop.f32.mrb[7].mxu0  ;;  %v510_v19 = vmax.f32 %v504_v14, 0.0 }
 0x2e4   :  { %v511_v20 = vmax.f32 %v507_v17, 0.0 }
 0x2e6   :  { %v512_v21 = vpack.c.bf16 %v511_v20, %v510_v19 }
 0x2e8   :  { %728 = vmatmul.mubr.msk.bf16.vlgmr.msra.gmra.mrb[4].mxu1 %vm552_vm2, %v512_v21 }
 0x3bb   :  { %v590_v23 = vpop.f32.mrb[4].mxu1 }
 0x3bc   :  { %v591_v24 = vadd.f32 %v657_v22, %v590_v23  ;;  %v729_v25 = vpop.f32.mrb[5].mxu1 }
 0x3bd   :  { %v593_v26 = vpop.f32.mrb[6].mxu1 }
 0x3be   :  { %597 = vst [vmem:[#allocation8] sm:$0xff] %v591_v24  ;;  %v594_v27 = vadd.f32 %v657_v22, %v593_v26  ;;  %v730_v28 = vpop.f32.mrb[7].mxu1 }
 0x3c0   :  { %598 = vst [vmem:[#allocation8 + $0x8] sm:$0xff] %v594_v27 }
 0x3c1   :  { %866 = shalt.err (!%p863_p0)
}
 0x3c2   :  { %s867_s12 = scalar_lea.hbm %s1103_s9, 256 }
 0x3c3   :  { %p868_p1 = scmp.ne.s32.totalorder %s1103_s9, %s867_s12  ;;  %p871_p2 = scmp.lt.u32.totalorder %s867_s12, %s1103_s9 }
 0x3c5   :  { %p873_p3 = pnand %p871_p2, %p868_p1 }
 0x3c7   :  { %876 = shalt.err (!%p873_p3)
}
 0x3c8   :  { %s892_s29 = smov 128   ;;  %s893_s30 = smov 8  }
 0x3c9   :  { %610 = dma.vmem_to_hbm [thread:$0]  %s605_s25, 256, %s1103_s9, [#allocation4], %s892_s29, %s892_s29, %s893_s30  }
 0x3ca   :  { %881 = dma.done.wait [#allocation4], 256  }
 0x3cb   :  { %882 = vsyncadd [#allocation4], 4294967040 }
 0x3cc   :  { %614 = vsyncpa [#allocation3], 1 }
 0x3cd   :  { %615 = vsyncpa [#allocation6], 1 }
 0x3ce   :  { %616 = vsyncpa [#allocation4], 1 }

</bundles_post_ra>
